<compile_context>
chip_gen: v5e
topology: v5e:2x2
jax: 0.10.0
libtpu: 0.0.40
codegen_flags: <defaults>
</compile_context>

<pallas_src>
from functools import partial

import jax
import jax.numpy as jnp
from jax.experimental import pallas as pl
from jax.experimental.pallas import tpu as pltpu


def _round_up(x, m):
    return (x + m - 1) // m * m


def _actor_kernel(max_action,
                  x_ref,                       # (tm, in_pad)  lane-dense [x|eps|0]
                  w1_ref, b1_ref,              # (in_pad, H), (1, H)
                  w2_ref, b2_ref,              # (H, H), (1, H)
                  w3_ref, b3_ref,              # (H, H), (1, H)
                  w4_ref, b4_ref,              # (H, out_pad), (1, out_pad)
                  o_ref):                      # (tm, out_pad)
    """Fused: relu(fc1) -> relu(fc2) -> relu(fc3) -> max_action * tanh(fc4)."""
    wt = w1_ref.dtype  # f32 by default; bf16 if prepare_actor_params chose it

    h = jnp.dot(x_ref[...].astype(wt), w1_ref[...],
                preferred_element_type=jnp.float32) + b1_ref[...]
    h = jnp.maximum(h, 0.0)

    h = jnp.dot(h.astype(wt), w2_ref[...],
                preferred_element_type=jnp.float32) + b2_ref[...]
    h = jnp.maximum(h, 0.0)

    h = jnp.dot(h.astype(wt), w3_ref[...],
                preferred_element_type=jnp.float32) + b3_ref[...]
    h = jnp.maximum(h, 0.0)

    a = jnp.dot(h.astype(wt), w4_ref[...],
                preferred_element_type=jnp.float32) + b4_ref[...]
    o_ref[...] = max_action * jnp.tanh(a)


def init_actor_params(key, obs, goal, action, hidden=256, dtype=jnp.float32):
    """PyTorch-nn.Linear-style init (uniform +-1/sqrt(fan_in)).

    Weights are stored already transposed: (in_features, out_features).
    Biases are stored as (1, out_features).
    """
    in_dim = obs + goal + action
    dims = [(in_dim, hidden), (hidden, hidden), (hidden, hidden), (hidden, action)]
    params = {}
    for i, (fan_in, fan_out) in enumerate(dims, start=1):
        key, kw, kb = jax.random.split(key, 3)
        bound = 1.0 / jnp.sqrt(jnp.asarray(fan_in, dtype))
        params[f"w{i}"] = jax.random.uniform(
            kw, (fan_in, fan_out), dtype, minval=-bound, maxval=bound)
        params[f"b{i}"] = jax.random.uniform(
            kb, (1, fan_out), dtype, minval=-bound, maxval=bound)
    return params


def prepare_actor_params(params, obs_goal_dim, weights_dtype=jnp.float32):
    """One-time prep:
      * W1 rows zero-padded from (obs+goal+action) to a 128-multiple so the
        packed [x | eps | 0] LHS can hit it with a single lane-dense matmul.
      * W4 / b4 zero-padded to 128 output lanes (lane-dense output stores).
      * Optional bf16 weight cast (accumulation stays f32 in the kernel).
    """
    hidden = params["w2"].shape[0]
    action = params["w4"].shape[1]
    in_dim = obs_goal_dim + action
    in_pad = _round_up(in_dim, 128)
    out_pad = _round_up(action, 128)

    w1p = jnp.zeros((in_pad, hidden), jnp.float32).at[:in_dim].set(
        params["w1"].astype(jnp.float32))
    w4p = jnp.zeros((hidden, out_pad), jnp.float32).at[:, :action].set(
        params["w4"].astype(jnp.float32))
    b4p = jnp.zeros((1, out_pad), jnp.float32).at[:, :action].set(
        params["b4"].astype(jnp.float32))

    return {
        "w1": w1p.astype(weights_dtype),
        "b1": params["b1"].astype(jnp.float32),
        "w2": params["w2"].astype(weights_dtype),
        "b2": params["b2"].astype(jnp.float32),
        "w3": params["w3"].astype(weights_dtype),
        "b3": params["b3"].astype(jnp.float32),
        "w4": w4p.astype(weights_dtype),
        "b4": b4p,
    }


def _actor_forward(params, x, key, *, action_dim, max_action=1.0,
                   std=1.0, epsilon_limit=5.0):
    batch, d_xg = x.shape
    hidden = params["w2"].shape[0]
    in_pad = params["w1"].shape[0]
    out_pad = params["w4"].shape[1]

    # epsilon = clip(std * N(0,1), +-limit), drawn OUTSIDE the kernel
    # (portable, keyed, and keeps the EUP slot free inside the kernel).
    eps = std * jax.random.normal(key, (batch, action_dim), jnp.float32)
    eps = jnp.clip(eps, -epsilon_limit, epsilon_limit)

    # Batch tiling: one tile for small batches; >=2 tiles (core-shardable on
    # v7x) with up to 512 rows per tile for big batches.
    if batch <= 256:
        tm = _round_up(max(batch, 1), 8)
        n_tiles = 1
    else:
        tm = min(512, _round_up(pl.cdiv(batch, 2), 8))
        n_tiles = pl.cdiv(batch, tm)
    batch_pad = tm * n_tiles

    # Pack the lane-dense LHS: [x | eps | 0-pad] with zero-padded tail rows.
    x_in = jnp.zeros((batch_pad, in_pad), jnp.float32)
    x_in = x_in.at[:batch, :d_xg].set(x)
    x_in = x_in.at[:batch, d_xg:d_xg + action_dim].set(eps)

    resident = lambda i: (0, 0)   # weights / biases: same block every grid step
    tile_row = lambda i: (i, 0)   # input / output: walk the batch

    flops = 2 * batch_pad * (in_pad * hidden + 2 * hidden * hidden
                             + hidden * out_pad)
    bytes_accessed = 4 * (batch_pad * in_pad + batch_pad * out_pad
                          + in_pad * hidden + 2 * hidden * hidden
                          + hidden * out_pad + 3 * hidden + out_pad)

    out = pl.pallas_call(
        partial(_actor_kernel, float(max_action)),
        out_shape=jax.ShapeDtypeStruct((batch_pad, out_pad), jnp.float32),
        grid_spec=pltpu.PrefetchScalarGridSpec(
            num_scalar_prefetch=0,
            grid=(n_tiles,),
            in_specs=[
                pl.BlockSpec((tm, in_pad), tile_row),       # packed [x|eps]
                pl.BlockSpec((in_pad, hidden), resident),   # W1 (padded rows)
                pl.BlockSpec((1, hidden), resident),        # b1
                pl.BlockSpec((hidden, hidden), resident),   # W2
                pl.BlockSpec((1, hidden), resident),        # b2
                pl.BlockSpec((hidden, hidden), resident),   # W3
                pl.BlockSpec((1, hidden), resident),        # b3
                pl.BlockSpec((hidden, out_pad), resident),  # W4 (padded lanes)
                pl.BlockSpec((1, out_pad), resident),       # b4 (padded lanes)
            ],
            out_specs=pl.BlockSpec((tm, out_pad), tile_row),
        ),
        compiler_params=pltpu.CompilerParams(
            dimension_semantics=("parallel",)),
        cost_estimate=pl.CostEstimate(
            flops=int(flops),
            transcendentals=int(batch_pad * out_pad),   # tanh only
            bytes_accessed=int(bytes_accessed)),
    )(
        x_in,
        params["w1"], params["b1"],
        params["w2"], params["b2"],
        params["w3"], params["b3"],
        params["w4"], params["b4"],
    )
    return out[:batch, :action_dim]


# jit once; max_action is baked into the kernel as a constant, action_dim is
# needed for static shapes.  std / epsilon_limit stay dynamic (wrapper-only).
actor_forward = jax.jit(_actor_forward,
                        static_argnames=("action_dim", "max_action"))


if __name__ == "__main__":
    env_params = {"obs": 10, "goal": 5, "action": 4, "action_max": 1.0}
    d_xg = env_params["obs"] + env_params["goal"]
    batch = 8

    root = jax.random.PRNGKey(0)
    k_params, k_x, k_eps = jax.random.split(root, 3)

    raw_params = init_actor_params(
        k_params, env_params["obs"], env_params["goal"], env_params["action"])
    params = prepare_actor_params(raw_params, d_xg)

    x = jax.random.normal(k_x, (batch, d_xg), dtype=jnp.float32)

    actions = jax.block_until_ready(
        actor_forward(params, x, k_eps,
                      action_dim=env_params["action"],
                      max_action=env_params["action_max"],
                      std=1.0, epsilon_limit=5.0))

    # --- pure-JAX reference with the *same* keyed epsilon ---
    eps_ref = jnp.clip(
        1.0 * jax.random.normal(k_eps, (batch, env_params["action"]), jnp.float32),
        -5.0, 5.0)
    x_cat = jnp.concatenate([x, eps_ref], axis=1)
    hp = jax.lax.Precision.HIGHEST
    h = jnp.maximum(jnp.dot(x_cat, raw_params["w1"], precision=hp) + raw_params["b1"], 0.0)
    h = jnp.maximum(jnp.dot(h, raw_params["w2"], precision=hp) + raw_params["b2"], 0.0)
    h = jnp.maximum(jnp.dot(h, raw_params["w3"], precision=hp) + raw_params["b3"], 0.0)
    ref = env_params["action_max"] * jnp.tanh(
        jnp.dot(h, raw_params["w4"], precision=hp) + raw_params["b4"])

    max_err = float(jnp.max(jnp.abs(actions - ref)))
    assert actions.shape == (batch, env_params["action"])
    assert bool(jnp.all(jnp.isfinite(actions)))
    assert bool(jnp.all(jnp.abs(actions) <= env_params["action_max"] + 1e-6))
    # tolerance accounts for MXU f32 (bf16 multi-pass) vs HIGHEST-precision reference
    assert jnp.allclose(actions, ref, atol=1e-2, rtol=1e-2), max_err
    print("KERNEL_OK")
</pallas_src>

<mosaic_0001>
module attributes {stable_mosaic.version = 11 : i64} {
  func.func @_actor_kernel(%arg0: i32, %arg1: memref<8x128xf32, #tpu.memory_space<vmem>>, %arg2: memref<128x256xf32, #tpu.memory_space<vmem>>, %arg3: memref<1x256xf32, #tpu.memory_space<vmem>>, %arg4: memref<256x256xf32, #tpu.memory_space<vmem>>, %arg5: memref<1x256xf32, #tpu.memory_space<vmem>>, %arg6: memref<256x256xf32, #tpu.memory_space<vmem>>, %arg7: memref<1x256xf32, #tpu.memory_space<vmem>>, %arg8: memref<256x128xf32, #tpu.memory_space<vmem>>, %arg9: memref<1x128xf32, #tpu.memory_space<vmem>>, %arg10: memref<8x128xf32, #tpu.memory_space<vmem>>) attributes {dimension_semantics = [#tpu.dimension_semantics<parallel>], iteration_bounds = array<i64: 1>, scalar_prefetch = 0 : i64, scratch_operands = 0 : i64, tpu.core_type = #tpu.core_type<tc>, window_params = [{transform_indices = @transform_0, window_bounds = array<i64: 8, 128>}, {pipeline_mode = #tpu.pipeline_mode<synchronous>, transform_indices = @transform_1, window_bounds = array<i64: 128, 256>}, {pipeline_mode = #tpu.pipeline_mode<synchronous>, transform_indices = @transform_2, window_bounds = array<i64: 1, 256>}, {pipeline_mode = #tpu.pipeline_mode<synchronous>, transform_indices = @transform_3, window_bounds = array<i64: 256, 256>}, {pipeline_mode = #tpu.pipeline_mode<synchronous>, transform_indices = @transform_4, window_bounds = array<i64: 1, 256>}, {pipeline_mode = #tpu.pipeline_mode<synchronous>, transform_indices = @transform_5, window_bounds = array<i64: 256, 256>}, {pipeline_mode = #tpu.pipeline_mode<synchronous>, transform_indices = @transform_6, window_bounds = array<i64: 1, 256>}, {pipeline_mode = #tpu.pipeline_mode<synchronous>, transform_indices = @transform_7, window_bounds = array<i64: 256, 128>}, {pipeline_mode = #tpu.pipeline_mode<synchronous>, transform_indices = @transform_8, window_bounds = array<i64: 1, 128>}, {transform_indices = @transform_9, window_bounds = array<i64: 8, 128>}]} {
    %c0 = arith.constant 0 : index
    %c0_0 = arith.constant 0 : index
    %0 = vector.load %arg1[%c0, %c0_0] : memref<8x128xf32, #tpu.memory_space<vmem>>, vector<8x128xf32>
    %c0_1 = arith.constant 0 : index
    %c0_2 = arith.constant 0 : index
    %1 = vector.load %arg2[%c0_1, %c0_2] : memref<128x256xf32, #tpu.memory_space<vmem>>, vector<128x256xf32>
    %cst = arith.constant dense<0.000000e+00> : vector<8x256xf32>
    %2 = tpu.matmul %0, %1, %cst {dimension_numbers = #tpu.dot_dimension_numbers<[1], [0], [0], [1], [0, 0, 1, 1], [], []>} : vector<8x128xf32>, vector<128x256xf32>, vector<8x256xf32> -> vector<8x256xf32>
    %c0_3 = arith.constant 0 : index
    %c0_4 = arith.constant 0 : index
    %3 = vector.load %arg3[%c0_3, %c0_4] : memref<1x256xf32, #tpu.memory_space<vmem>>, vector<1x256xf32>
    %4 = vector.broadcast %3 : vector<1x256xf32> to vector<8x256xf32>
    %5 = arith.addf %2, %4 : vector<8x256xf32>
    %cst_5 = arith.constant 0.000000e+00 : f32
    %6 = vector.broadcast %cst_5 : f32 to vector<8x256xf32>
    %7 = arith.maximumf %5, %6 : vector<8x256xf32>
    %c0_6 = arith.constant 0 : index
    %c0_7 = arith.constant 0 : index
    %8 = vector.load %arg4[%c0_6, %c0_7] : memref<256x256xf32, #tpu.memory_space<vmem>>, vector<256x256xf32>
    %cst_8 = arith.constant dense<0.000000e+00> : vector<8x256xf32>
    %9 = tpu.matmul %7, %8, %cst_8 {dimension_numbers = #tpu.dot_dimension_numbers<[1], [0], [0], [1], [0, 0, 1, 1], [], []>} : vector<8x256xf32>, vector<256x256xf32>, vector<8x256xf32> -> vector<8x256xf32>
    %c0_9 = arith.constant 0 : index
    %c0_10 = arith.constant 0 : index
    %10 = vector.load %arg5[%c0_9, %c0_10] : memref<1x256xf32, #tpu.memory_space<vmem>>, vector<1x256xf32>
    %11 = vector.broadcast %10 : vector<1x256xf32> to vector<8x256xf32>
    %12 = arith.addf %9, %11 : vector<8x256xf32>
    %cst_11 = arith.constant 0.000000e+00 : f32
    %13 = vector.broadcast %cst_11 : f32 to vector<8x256xf32>
    %14 = arith.maximumf %12, %13 : vector<8x256xf32>
    %c0_12 = arith.constant 0 : index
    %c0_13 = arith.constant 0 : index
    %15 = vector.load %arg6[%c0_12, %c0_13] : memref<256x256xf32, #tpu.memory_space<vmem>>, vector<256x256xf32>
    %cst_14 = arith.constant dense<0.000000e+00> : vector<8x256xf32>
    %16 = tpu.matmul %14, %15, %cst_14 {dimension_numbers = #tpu.dot_dimension_numbers<[1], [0], [0], [1], [0, 0, 1, 1], [], []>} : vector<8x256xf32>, vector<256x256xf32>, vector<8x256xf32> -> vector<8x256xf32>
    %c0_15 = arith.constant 0 : index
    %c0_16 = arith.constant 0 : index
    %17 = vector.load %arg7[%c0_15, %c0_16] : memref<1x256xf32, #tpu.memory_space<vmem>>, vector<1x256xf32>
    %18 = vector.broadcast %17 : vector<1x256xf32> to vector<8x256xf32>
    %19 = arith.addf %16, %18 : vector<8x256xf32>
    %cst_17 = arith.constant 0.000000e+00 : f32
    %20 = vector.broadcast %cst_17 : f32 to vector<8x256xf32>
    %21 = arith.maximumf %19, %20 : vector<8x256xf32>
    %c0_18 = arith.constant 0 : index
    %c0_19 = arith.constant 0 : index
    %22 = vector.load %arg8[%c0_18, %c0_19] : memref<256x128xf32, #tpu.memory_space<vmem>>, vector<256x128xf32>
    %cst_20 = arith.constant dense<0.000000e+00> : vector<8x128xf32>
    %23 = tpu.matmul %21, %22, %cst_20 {dimension_numbers = #tpu.dot_dimension_numbers<[1], [0], [0], [1], [0, 0, 1, 1], [], []>} : vector<8x256xf32>, vector<256x128xf32>, vector<8x128xf32> -> vector<8x128xf32>
    %c0_21 = arith.constant 0 : index
    %c0_22 = arith.constant 0 : index
    %24 = vector.load %arg9[%c0_21, %c0_22] : memref<1x128xf32, #tpu.memory_space<vmem>>, vector<1x128xf32>
    %25 = vector.broadcast %24 : vector<1x128xf32> to vector<8x128xf32>
    %26 = arith.addf %23, %25 : vector<8x128xf32>
    %27 = math.tanh %26 : vector<8x128xf32>
    %cst_23 = arith.constant 1.000000e+00 : f32
    %28 = vector.broadcast %cst_23 : f32 to vector<8x128xf32>
    %29 = arith.mulf %28, %27 : vector<8x128xf32>
    %c0_24 = arith.constant 0 : index
    %c0_25 = arith.constant 0 : index
    %30 = vector.load %arg10[%c0_24, %c0_25] : memref<8x128xf32, #tpu.memory_space<vmem>>, vector<8x128xf32>
    tpu.vector_store %arg10[%c0_24, %c0_25], %29 {strides = array<i32>} : memref<8x128xf32, #tpu.memory_space<vmem>>, vector<8x128xf32>,
    return
  }
  func.func @transform_0(%arg0: i32) -> (i32, i32) {
    %c0_i32 = arith.constant 0 : i32
    %c0_i32_0 = arith.constant 0 : i32
    return %arg0, %c0_i32 : i32, i32
  }
  func.func @transform_1(%arg0: i32) -> (i32, i32) {
    %c0_i32 = arith.constant 0 : i32
    %c0_i32_0 = arith.constant 0 : i32
    %c0_i32_1 = arith.constant 0 : i32
    return %c0_i32, %c0_i32_0 : i32, i32
  }
  func.func @transform_2(%arg0: i32) -> (i32, i32) {
    %c0_i32 = arith.constant 0 : i32
    %c0_i32_0 = arith.constant 0 : i32
    %c0_i32_1 = arith.constant 0 : i32
    return %c0_i32, %c0_i32_0 : i32, i32
  }
  func.func @transform_3(%arg0: i32) -> (i32, i32) {
    %c0_i32 = arith.constant 0 : i32
    %c0_i32_0 = arith.constant 0 : i32
    %c0_i32_1 = arith.constant 0 : i32
    return %c0_i32, %c0_i32_0 : i32, i32
  }
  func.func @transform_4(%arg0: i32) -> (i32, i32) {
    %c0_i32 = arith.constant 0 : i32
    %c0_i32_0 = arith.constant 0 : i32
    %c0_i32_1 = arith.constant 0 : i32
    return %c0_i32, %c0_i32_0 : i32, i32
  }
  func.func @transform_5(%arg0: i32) -> (i32, i32) {
    %c0_i32 = arith.constant 0 : i32
    %c0_i32_0 = arith.constant 0 : i32
    %c0_i32_1 = arith.constant 0 : i32
    return %c0_i32, %c0_i32_0 : i32, i32
  }
  func.func @transform_6(%arg0: i32) -> (i32, i32) {
    %c0_i32 = arith.constant 0 : i32
    %c0_i32_0 = arith.constant 0 : i32
    %c0_i32_1 = arith.constant 0 : i32
    return %c0_i32, %c0_i32_0 : i32, i32
  }
  func.func @transform_7(%arg0: i32) -> (i32, i32) {
    %c0_i32 = arith.constant 0 : i32
    %c0_i32_0 = arith.constant 0 : i32
    %c0_i32_1 = arith.constant 0 : i32
    return %c0_i32, %c0_i32_0 : i32, i32
  }
  func.func @transform_8(%arg0: i32) -> (i32, i32) {
    %c0_i32 = arith.constant 0 : i32
    %c0_i32_0 = arith.constant 0 : i32
    %c0_i32_1 = arith.constant 0 : i32
    return %c0_i32, %c0_i32_0 : i32, i32
  }
  func.func @transform_9(%arg0: i32) -> (i32, i32) {
    %c0_i32 = arith.constant 0 : i32
    %c0_i32_0 = arith.constant 0 : i32
    return %arg0, %c0_i32 : i32, i32
  }
}

</mosaic_0001>

<bundles_post_ra>
// kernel: _actor_forward.1
= control target key start
LH: loop header
LB: loop body
LE: loop exit
PB: predicated region body
PF: predicated region fallthrough
CT: control target
= control target key end

     0   :  { %14 = vsyncpa [#allocation3], 0  ;;  %s766_s0 = inlined_call_operand.vmem [shape: f32[8,128], index: 0, kind: input, shape index: {}]   ;;  %s767_s1 = inlined_call_operand.hbm [shape: f32[128,256], index: 1, kind: input, shape index: {}]   ;;  %s768_s2 = inlined_call_operand.vmem [shape: f32[1,256], index: 2, kind: input, shape index: {}]   ;;  %s769_s3 = inlined_call_operand.hbm [shape: f32[256,256], index: 3, kind: input, shape index: {}]   ;;  %s770_s4 = inlined_call_operand.vmem [shape: f32[1,256], index: 4, kind: input, shape index: {}]   ;;  %s771_s5 = inlined_call_operand.hbm [shape: f32[256,256], index: 5, kind: input, shape index: {}]   ;;  %s772_s6 = inlined_call_operand.vmem [shape: f32[1,256], index: 6, kind: input, shape index: {}]   ;;  %s773_s7 = inlined_call_operand.hbm [shape: f32[256,128], index: 7, kind: input, shape index: {}]   ;;  %s774_s8 = inlined_call_operand.vmem [shape: f32[1,128], index: 8, kind: input, shape index: {}]   ;;  %s775_s9 = inlined_call_operand.vmem [shape: f32[8,128], index: 9, kind: output, shape index: {}]  }
   0x1   :  { %15 = vsyncpa [#allocation5], 0 }
   0x2   :  { %16 = vsyncpa [#allocation8], 0  ;;  %s38_s11 = sshll.u32 %s769_s3, 4  ;;  %s678_s12 = smov [#allocation4]   ;;  %s39_s11 = int_to_ptr.hbm [resolvable:$true] %s38_s11 }
   0x3   :  { %s40_s13 = sshll.u32 %s678_s12, 4  ;;  %s23_s16 = sshll.u32 %s767_s1, 4  ;;  %s41_s13 = int_to_ptr.vmem [resolvable:$true] %s40_s13  ;;  %s24_s16 = int_to_ptr.hbm [resolvable:$true] %s23_s16 }
   0x4   :  { %s679_s17 = smov 256   ;;  %s680_s18 = smov 16  }
   0x5   :  { %46 = dma.hbm_to_vmem [thread:$0]  %s39_s11, 8192, %s41_s13, [#allocation5], %s679_s17, %s679_s17, %s680_s18  }
   0x6   :  { %s681_s19 = smov [#allocation2]   ;;  %s53_s23 = sshll.u32 %s771_s5, 4  ;;  %s54_s23 = int_to_ptr.hbm [resolvable:$true] %s53_s23 }
   0x7   :  { %s25_s20 = sshll.u32 %s681_s19, 4  ;;  %s68_s25 = sshll.u32 %s773_s7, 4  ;;  %s26_s20 = int_to_ptr.vmem [resolvable:$true] %s25_s20  ;;  %s69_s25 = int_to_ptr.hbm [resolvable:$true] %s68_s25 }
   0x8   :  { %31 = dma.hbm_to_vmem [thread:$0]  %s24_s16, 4096, %s26_s20, [#allocation3], %s679_s17, %s679_s17, %s680_s18  }
   0x9   :  { %s682_s26 = smov [#allocation6]   ;;  %s683_s1 = smov [#allocation7]  }
   0xa   :  { %s55_s27 = sshll.u32 %s682_s26, 4  ;;  %s70_s28 = sshll.u32 %s683_s1, 4  ;;  %s56_s27 = int_to_ptr.vmem [resolvable:$true] %s55_s27  ;;  %s71_s28 = int_to_ptr.vmem [resolvable:$true] %s70_s28 }
   0xb   :  { %61 = dma.hbm_to_vmem [thread:$0]  %s54_s23, 8192, %s56_s27, [#allocation5], %s679_s17, %s679_s17, %s680_s18  }
   0xc   :  { %s684_s29 = smov 128   ;;  %s685_s30 = smov 8  }
   0xd   :  { %76 = dma.hbm_to_vmem [thread:$0]  %s69_s25, 4096, %s71_s28, [#allocation8], %s684_s29, %s684_s29, %s685_s30  }
   0xe   :  { %672 = dma.done.wait [#allocation3], 4096  }
   0xf   :  { %673 = vsyncadd [#allocation3], 4294963200 }
  0x10   :  { %674 = dma.done.wait [#allocation5], 16384  }
  0x11   :  { %675 = vsyncadd [#allocation5], 4294950912 }
  0x12   :  { %676 = dma.done.wait [#allocation8], 4096  }
  0x13   :  { %677 = vsyncadd [#allocation8], 4294963200  ;;  %v126_v0 = vld [vmem:[#allocation2 + $0xf0] sm:$0xff]  ;;  %v124_v1 = vld [vmem:[#allocation2 + $0xe0] sm:$0xff] }
  0x14   :  { %v127_v2 = vld [vmem:[#allocation2 + $0xf8] sm:$0xff]  ;;  %134 = vmatpush.msra.mxu0 %v126_v0  ;;  %v125_v3 = vld [vmem:[#allocation2 + $0xe8] sm:$0xff]  ;;  %v122_v4 = vld [vmem:[#allocation2 + $0xd0] sm:$0xff] }
  0x15   :  { %154 = vmatpush.msra.mxu1 %v127_v2  ;;  %v123_v5 = vld [vmem:[#allocation2 + $0xd8] sm:$0xff]  ;;  %v120_v6 = vld [vmem:[#allocation2 + $0xc0] sm:$0xff]  ;;  %v121_v7 = vld [vmem:[#allocation2 + $0xc8] sm:$0xff] }
  0x16   :  { %135 = vmatpush.msra.mxu0 %v124_v1  ;;  %v118_v8 = vld [vmem:[#allocation2 + $0xb0] sm:$0xff]  ;;  %v119_v9 = vld [vmem:[#allocation2 + $0xb8] sm:$0xff]  ;;  %v116_v10 = vld [vmem:[#allocation2 + $0xa0] sm:$0xff] }
  0x17   :  { %155 = vmatpush.msra.mxu1 %v125_v3  ;;  %v117_v11 = vld [vmem:[#allocation2 + $0xa8] sm:$0xff]  ;;  %v114_v12 = vld [vmem:[#allocation2 + $0x90] sm:$0xff]  ;;  %v115_v13 = vld [vmem:[#allocation2 + $0x98] sm:$0xff] }
  0x18   :  { %136 = vmatpush.msra.mxu0 %v122_v4  ;;  %v206_v14 = vld [vmem:[#allocation4 + $0xf0] sm:$0xff]  ;;  %v204_v15 = vld [vmem:[#allocation4 + $0xe0] sm:$0xff]  ;;  %v113_v17 = vld [vmem:[#allocation2 + $0x88] sm:$0xff] }
  0x19   :  { %156 = vmatpush.msra.mxu1 %v123_v5  ;;  %v112_v16 = vld [vmem:[#allocation2 + $0x80] sm:$0xff]  ;;  %246 = vmatpush.msra.mxu2 %v206_v14  ;;  %v238_v18 = vld [vmem:[#allocation4 + $0x1f0] sm:$0xff]  ;;  %v111_v22 = vld [vmem:[#allocation2 + $0x78] sm:$0xff] }
  0x1a   :  { %137 = vmatpush.msra.mxu0 %v120_v6  ;;  %v202_v19 = vld [vmem:[#allocation4 + $0xd0] sm:$0xff]  ;;  %v236_v20 = vld [vmem:[#allocation4 + $0x1e0] sm:$0xff]  ;;  %266 = vmatpush.msra.mxu3 %v238_v18  ;;  %v109_v26 = vld [vmem:[#allocation2 + $0x68] sm:$0xff] }
  0x1b   :  { %157 = vmatpush.msra.mxu1 %v121_v7  ;;  %v110_v21 = vld [vmem:[#allocation2 + $0x70] sm:$0xff]  ;;  %247 = vmatpush.msra.mxu2 %v204_v15  ;;  %v200_v23 = vld [vmem:[#allocation4 + $0xc0] sm:$0xff]  ;;  %v107_v30 = vld [vmem:[#allocation2 + $0x58] sm:$0xff] }
  0x1c   :  { %138 = vmatpush.msra.mxu0 %v118_v8  ;;  %v234_v24 = vld [vmem:[#allocation4 + $0x1d0] sm:$0xff]  ;;  %v108_v25 = vld [vmem:[#allocation2 + $0x60] sm:$0xff]  ;;  %267 = vmatpush.msra.mxu3 %v236_v20  ;;  %v105_v34 = vld [vmem:[#allocation2 + $0x48] sm:$0xff] }
  0x1d   :  { %158 = vmatpush.msra.mxu1 %v119_v9  ;;  %248 = vmatpush.msra.mxu2 %v202_v19  ;;  %v198_v27 = vld [vmem:[#allocation4 + $0xb0] sm:$0xff]  ;;  %v232_v28 = vld [vmem:[#allocation4 + $0x1c0] sm:$0xff]  ;;  %v103_v38 = vld [vmem:[#allocation2 + $0x38] sm:$0xff] }
  0x1e   :  { %139 = vmatpush.msra.mxu0 %v116_v10  ;;  %v106_v29 = vld [vmem:[#allocation2 + $0x50] sm:$0xff]  ;;  %268 = vmatpush.msra.mxu3 %v234_v24  ;;  %v196_v31 = vld [vmem:[#allocation4 + $0xa0] sm:$0xff]  ;;  %v101_v42 = vld [vmem:[#allocation2 + $0x28] sm:$0xff] }
  0x1f   :  { %159 = vmatpush.msra.mxu1 %v117_v11  ;;  %249 = vmatpush.msra.mxu2 %v200_v23  ;;  %v230_v32 = vld [vmem:[#allocation4 + $0x1b0] sm:$0xff]  ;;  %v104_v33 = vld [vmem:[#allocation2 + $0x40] sm:$0xff]  ;;  %v99_v46 = vld [vmem:[#allocation2 + $0x18] sm:$0xff] }
  0x20   :  { %140 = vmatpush.msra.mxu0 %v114_v12  ;;  %269 = vmatpush.msra.mxu3 %v232_v28  ;;  %v194_v35 = vld [vmem:[#allocation4 + $0x90] sm:$0xff]  ;;  %v228_v36 = vld [vmem:[#allocation4 + $0x1a0] sm:$0xff]  ;;  %v97_v50 = vld [vmem:[#allocation2 + $0x8] sm:$0xff] }
  0x21   :  { %160 = vmatpush.msra.mxu1 %v115_v13  ;;  %250 = vmatpush.msra.mxu2 %v198_v27  ;;  %v102_v37 = vld [vmem:[#allocation2 + $0x30] sm:$0xff]  ;;  %v192_v39 = vld [vmem:[#allocation4 + $0x80] sm:$0xff]  ;;  %v207_v52 = vld [vmem:[#allocation4 + $0xf8] sm:$0xff] }
  0x22   :  { %141 = vmatpush.msra.mxu0 %v112_v16  ;;  %270 = vmatpush.msra.mxu3 %v230_v32  ;;  %v226_v40 = vld [vmem:[#allocation4 + $0x190] sm:$0xff]  ;;  %v100_v41 = vld [vmem:[#allocation2 + $0x20] sm:$0xff]  ;;  %v239_v53 = vld [vmem:[#allocation4 + $0x1f8] sm:$0xff] }
  0x23   :  { %161 = vmatpush.msra.mxu1 %v113_v17  ;;  %251 = vmatpush.msra.mxu2 %v196_v31  ;;  %v190_v43 = vld [vmem:[#allocation4 + $0x70] sm:$0xff]  ;;  %v224_v44 = vld [vmem:[#allocation4 + $0x180] sm:$0xff]  ;;  %v205_v56 = vld [vmem:[#allocation4 + $0xe8] sm:$0xff] }
  0x24   :  { %142 = vmatpush.msra.mxu0 %v110_v21  ;;  %271 = vmatpush.msra.mxu3 %v228_v36  ;;  %v98_v45 = vld [vmem:[#allocation2 + $0x10] sm:$0xff]  ;;  %v188_v47 = vld [vmem:[#allocation4 + $0x60] sm:$0xff]  ;;  %v237_v57 = vld [vmem:[#allocation4 + $0x1e8] sm:$0xff] }
  0x25   :  { %162 = vmatpush.msra.mxu1 %v111_v22  ;;  %252 = vmatpush.msra.mxu2 %v194_v35  ;;  %v222_v48 = vld [vmem:[#allocation4 + $0x170] sm:$0xff]  ;;  %v96_v49 = vld [vmem:[#allocation2] sm:$0xff]  ;;  %v203_v60 = vld [vmem:[#allocation4 + $0xd8] sm:$0xff] }
  0x26   :  { %143 = vmatpush.msra.mxu0 %v108_v25  ;;  %272 = vmatpush.msra.mxu3 %v226_v40  ;;  %v95_v51 = vld [vmem:[%s766_s0] sm:$0xff]  ;;  %v186_v54 = vld [vmem:[#allocation4 + $0x50] sm:$0xff]  ;;  %v235_v61 = vld [vmem:[#allocation4 + $0x1d8] sm:$0xff] }
  0x27   :  { %163 = vmatpush.msra.mxu1 %v109_v26  ;;  %253 = vmatpush.msra.mxu2 %v192_v39  ;;  %v220_v55 = vld [vmem:[#allocation4 + $0x160] sm:$0xff]  ;;  %v218_v59 = vld [vmem:[#allocation4 + $0x150] sm:$0xff]  ;;  %v201_v0 = vld [vmem:[#allocation4 + $0xc8] sm:$0xff] }
  0x28   :  { %144 = vmatpush.msra.mxu0 %v106_v29  ;;  %273 = vmatpush.msra.mxu3 %v224_v44  ;;  %v184_v58 = vld [vmem:[#allocation4 + $0x40] sm:$0xff]  ;;  %v182_v62 = vld [vmem:[#allocation4 + $0x30] sm:$0xff]  ;;  %v233_v1 = vld [vmem:[#allocation4 + $0x1c8] sm:$0xff] }
  0x29   :  { %164 = vmatpush.msra.mxu1 %v107_v30  ;;  %254 = vmatpush.msra.mxu2 %v190_v43  ;;  %v216_v63 = vld [vmem:[#allocation4 + $0x140] sm:$0xff]  ;;  %v199_v2 = vld [vmem:[#allocation4 + $0xb8] sm:$0xff]  ;;  %v197_v4 = vld [vmem:[#allocation4 + $0xa8] sm:$0xff] }
  0x2a   :  { %145 = vmatpush.msra.mxu0 %v104_v33  ;;  %274 = vmatpush.msra.mxu3 %v222_v48  ;;  %v231_v3 = vld [vmem:[#allocation4 + $0x1b8] sm:$0xff]  ;;  %v229_v5 = vld [vmem:[#allocation4 + $0x1a8] sm:$0xff]  ;;  %v180_v19 = vld [vmem:[#allocation4 + $0x20] sm:$0xff] }
  0x2b   :  { %165 = vmatpush.msra.mxu1 %v105_v34  ;;  %255 = vmatpush.msra.mxu2 %v188_v47  ;;  %v195_v6 = vld [vmem:[#allocation4 + $0x98] sm:$0xff]  ;;  %v193_v8 = vld [vmem:[#allocation4 + $0x88] sm:$0xff]  ;;  %v214_v20 = vld [vmem:[#allocation4 + $0x130] sm:$0xff] }
  0x2c   :  { %146 = vmatpush.msra.mxu0 %v102_v37  ;;  %275 = vmatpush.msra.mxu3 %v220_v55  ;;  %v227_v7 = vld [vmem:[#allocation4 + $0x198] sm:$0xff]  ;;  %v225_v9 = vld [vmem:[#allocation4 + $0x188] sm:$0xff]  ;;  %v178_v23 = vld [vmem:[#allocation4 + $0x10] sm:$0xff] }
  0x2d   :  { %166 = vmatpush.msra.mxu1 %v103_v38  ;;  %256 = vmatpush.msra.mxu2 %v186_v54  ;;  %v191_v10 = vld [vmem:[#allocation4 + $0x78] sm:$0xff]  ;;  %v189_v12 = vld [vmem:[#allocation4 + $0x68] sm:$0xff]  ;;  %v212_v24 = vld [vmem:[#allocation4 + $0x120] sm:$0xff] }
  0x2e   :  { %147 = vmatpush.msra.mxu0 %v100_v41  ;;  %276 = vmatpush.msra.mxu3 %v218_v59  ;;  %v223_v11 = vld [vmem:[#allocation4 + $0x178] sm:$0xff]  ;;  %v221_v13 = vld [vmem:[#allocation4 + $0x168] sm:$0xff]  ;;  %v176_v27 = vld [vmem:[#allocation4] sm:$0xff] }
  0x2f   :  { %167 = vmatpush.msra.mxu1 %v101_v42  ;;  %257 = vmatpush.msra.mxu2 %v184_v58  ;;  %v187_v14 = vld [vmem:[#allocation4 + $0x58] sm:$0xff]  ;;  %v185_v16 = vld [vmem:[#allocation4 + $0x48] sm:$0xff]  ;;  %v210_v28 = vld [vmem:[#allocation4 + $0x110] sm:$0xff] }
  0x30   :  { %148 = vmatpush.msra.mxu0 %v98_v45  ;;  %277 = vmatpush.msra.mxu3 %v216_v63  ;;  %v219_v15 = vld [vmem:[#allocation4 + $0x158] sm:$0xff]  ;;  %v217_v17 = vld [vmem:[#allocation4 + $0x148] sm:$0xff]  ;;  %v208_v31 = vld [vmem:[#allocation4 + $0x100] sm:$0xff] }
  0x31   :  { %168 = vmatpush.msra.mxu1 %v99_v46  ;;  %258 = vmatpush.msra.mxu2 %v182_v62  ;;  %v183_v18 = vld [vmem:[#allocation4 + $0x38] sm:$0xff]  ;;  %v181_v21 = vld [vmem:[#allocation4 + $0x28] sm:$0xff]  ;;  %v390_v33 = vld [vmem:[#allocation6 + $0x1f0] sm:$0xff] }
  0x32   :  { %149 = vmatpush.msra.mxu0 %v96_v49  ;;  %278 = vmatpush.msra.mxu3 %v214_v20  ;;  %v215_v22 = vld [vmem:[#allocation4 + $0x138] sm:$0xff]  ;;  %v213_v26 = vld [vmem:[#allocation4 + $0x128] sm:$0xff]  ;;  %v388_v35 = vld [vmem:[#allocation6 + $0x1e0] sm:$0xff] }
  0x33   :  { %169 = vmatpush.msra.mxu1 %v97_v50  ;;  %150 = vmatmul.f32.vlgmr.msra.gmra.mxu0 %v95_v51  ;;  %v179_v25 = vld [vmem:[#allocation4 + $0x18] sm:$0xff]  ;;  %v177_v29 = vld [vmem:[#allocation4 + $0x8] sm:$0xff]  ;;  %v386_v37 = vld [vmem:[#allocation6 + $0x1d0] sm:$0xff] }
  0x34   :  { %170 = vmatmul.f32.vlgmr.msra.gmra.mxu1 %v95_v51  ;;  %286 = vmatpush.msrb.mxu0 %v207_v52  ;;  %v211_v30 = vld [vmem:[#allocation4 + $0x118] sm:$0xff]  ;;  %v209_v32 = vld [vmem:[#allocation4 + $0x108] sm:$0xff]  ;;  %v358_v38 = vld [vmem:[#allocation6 + $0xf0] sm:$0xff] }
  0x35   :  { %306 = vmatpush.msrb.mxu1 %v239_v53  ;;  %259 = vmatpush.msra.mxu2 %v180_v19  ;;  %v391_v34 = vld [vmem:[#allocation6 + $0x1f8] sm:$0xff]  ;;  %v389_v36 = vld [vmem:[#allocation6 + $0x1e8] sm:$0xff]  ;;  %v356_v41 = vld [vmem:[#allocation6 + $0xe0] sm:$0xff] }
  0x36   :  { %287 = vmatpush.msrb.mxu0 %v205_v56  ;;  %279 = vmatpush.msra.mxu3 %v212_v24  ;;  %v359_v39 = vld [vmem:[#allocation6 + $0xf8] sm:$0xff]  ;;  %v384_v42 = vld [vmem:[#allocation6 + $0x1c0] sm:$0xff]  ;;  %v357_v43 = vld [vmem:[#allocation6 + $0xe8] sm:$0xff] }
  0x37   :  { %307 = vmatpush.msrb.mxu1 %v237_v57  ;;  %260 = vmatpush.msra.mxu2 %v178_v23  ;;  %v387_v40 = vld [vmem:[#allocation6 + $0x1d8] sm:$0xff]  ;;  %v354_v44 = vld [vmem:[#allocation6 + $0xd0] sm:$0xff]  ;;  %v385_v45 = vld [vmem:[#allocation6 + $0x1c8] sm:$0xff] }
  0x38   :  { %288 = vmatpush.msrb.mxu0 %v203_v60  ;;  %280 = vmatpush.msra.mxu3 %v210_v28  ;;  %v355_v46 = vld [vmem:[#allocation6 + $0xd8] sm:$0xff]  ;;  %v382_v47 = vld [vmem:[#allocation6 + $0x1b0] sm:$0xff]  ;;  %v352_v48 = vld [vmem:[#allocation6 + $0xc0] sm:$0xff] }
  0x39   :  { %308 = vmatpush.msrb.mxu1 %v235_v61  ;;  %261 = vmatpush.msra.mxu2 %v176_v27  ;;  %v383_v49 = vld [vmem:[#allocation6 + $0x1b8] sm:$0xff]  ;;  %v353_v50 = vld [vmem:[#allocation6 + $0xc8] sm:$0xff]  ;;  %v380_v51 = vld [vmem:[#allocation6 + $0x1a0] sm:$0xff] }
  0x3a   :  { %289 = vmatpush.msrb.mxu0 %v201_v0  ;;  %281 = vmatpush.msra.mxu3 %v208_v31  ;;  %v350_v52 = vld [vmem:[#allocation6 + $0xb0] sm:$0xff]  ;;  %v381_v53 = vld [vmem:[#allocation6 + $0x1a8] sm:$0xff]  ;;  %v351_v54 = vld [vmem:[#allocation6 + $0xb8] sm:$0xff] }
  0x3b   :  { %309 = vmatpush.msrb.mxu1 %v233_v1  ;;  %398 = vmatpush.msrb.mxu2 %v358_v38  ;;  %v378_v55 = vld [vmem:[#allocation6 + $0x190] sm:$0xff]  ;;  %v348_v56 = vld [vmem:[#allocation6 + $0xa0] sm:$0xff]  ;;  %v379_v57 = vld [vmem:[#allocation6 + $0x198] sm:$0xff] }
  0x3c   :  { %290 = vmatpush.msrb.mxu0 %v199_v2  ;;  %418 = vmatpush.msrb.mxu3 %v390_v33  ;;  %v349_v58 = vld [vmem:[#allocation6 + $0xa8] sm:$0xff]  ;;  %v376_v59 = vld [vmem:[#allocation6 + $0x180] sm:$0xff]  ;;  %v346_v60 = vld [vmem:[#allocation6 + $0x90] sm:$0xff] }
  0x3d   :  { %310 = vmatpush.msrb.mxu1 %v231_v3  ;;  %399 = vmatpush.msrb.mxu2 %v356_v41  ;;  %v377_v61 = vld [vmem:[#allocation6 + $0x188] sm:$0xff]  ;;  %v347_v62 = vld [vmem:[#allocation6 + $0x98] sm:$0xff]  ;;  %v374_v63 = vld [vmem:[#allocation6 + $0x170] sm:$0xff] }
  0x3e   :  { %291 = vmatpush.msrb.mxu0 %v197_v4  ;;  %419 = vmatpush.msrb.mxu3 %v388_v35  ;;  %v344_v0 = vld [vmem:[#allocation6 + $0x80] sm:$0xff]  ;;  %v375_v1 = vld [vmem:[#allocation6 + $0x178] sm:$0xff]  ;;  %v345_v2 = vld [vmem:[#allocation6 + $0x88] sm:$0xff] }
  0x3f   :  { %311 = vmatpush.msrb.mxu1 %v229_v5  ;;  %400 = vmatpush.msrb.mxu2 %v354_v44  ;;  %v372_v3 = vld [vmem:[#allocation6 + $0x160] sm:$0xff]  ;;  %v342_v4 = vld [vmem:[#allocation6 + $0x70] sm:$0xff]  ;;  %v373_v5 = vld [vmem:[#allocation6 + $0x168] sm:$0xff] }
  0x40   :  { %292 = vmatpush.msrb.mxu0 %v195_v6  ;;  %420 = vmatpush.msrb.mxu3 %v386_v37  ;;  %v343_v6 = vld [vmem:[#allocation6 + $0x78] sm:$0xff]  ;;  %v340_v20 = vld [vmem:[#allocation6 + $0x60] sm:$0xff]  ;;  %v338_v24 = vld [vmem:[#allocation6 + $0x50] sm:$0xff] }
  0x41   :  { %312 = vmatpush.msrb.mxu1 %v227_v7  ;;  %401 = vmatpush.msrb.mxu2 %v352_v48  ;;  %v370_v7 = vld [vmem:[#allocation6 + $0x150] sm:$0xff]  ;;  %v367_v23 = vld [vmem:[#allocation6 + $0x138] sm:$0xff]  ;;  %v365_v27 = vld [vmem:[#allocation6 + $0x128] sm:$0xff] }
  0x42   :  { %293 = vmatpush.msrb.mxu0 %v193_v8  ;;  %421 = vmatpush.msrb.mxu3 %v384_v42  ;;  %v371_v8 = vld [vmem:[#allocation6 + $0x158] sm:$0xff]  ;;  %v336_v28 = vld [vmem:[#allocation6 + $0x40] sm:$0xff]  ;;  %v361_v35 = vld [vmem:[#allocation6 + $0x108] sm:$0xff] }
  0x43   :  { %313 = vmatpush.msrb.mxu1 %v225_v9  ;;  %402 = vmatpush.msrb.mxu2 %v350_v52  ;;  %v128_v9 = vld [vmem:[%s768_s2] sm:$0x3]  ;;  %v363_v31 = vld [vmem:[#allocation6 + $0x118] sm:$0xff]  ;;  %v333_v37 = vld [vmem:[#allocation6 + $0x28] sm:$0xff] }
  0x44   :  { %294 = vmatpush.msrb.mxu0 %v191_v10  ;;  %422 = vmatpush.msrb.mxu3 %v382_v47  ;;  %v368_v10 = vld [vmem:[#allocation6 + $0x140] sm:$0xff]  ;;  %v330_v38 = vld [vmem:[#allocation6 + $0x10] sm:$0xff]  ;;  %v329_v41 = vld [vmem:[#allocation6 + $0x8] sm:$0xff] }
  0x45   :  { %314 = vmatpush.msrb.mxu1 %v223_v11  ;;  %403 = vmatpush.msrb.mxu2 %v348_v56  ;;  %v369_v11 = vld [vmem:[#allocation6 + $0x148] sm:$0xff]  ;;  %v360_v33 = vld [vmem:[#allocation6 + $0x100] sm:$0xff]  ;;  %v511_v42 = vld [vmem:[#allocation7 + $0xf8] sm:$0xff] }
  0x46   :  { %295 = vmatpush.msrb.mxu0 %v189_v12  ;;  %423 = vmatpush.msrb.mxu3 %v380_v51  ;;  %v130_v12 = vperm.slane %v128_v9, 0  ;;  %v495_v44 = vld [vmem:[#allocation7 + $0x78] sm:$0xff]  ;;  %v493_v47 = vld [vmem:[#allocation7 + $0x68] sm:$0xff]  ;;  %v508_v48 = vld [vmem:[#allocation7 + $0xe0] sm:$0xff] }
  0x47   :  { %315 = vmatpush.msrb.mxu1 %v221_v13  ;;  %404 = vmatpush.msrb.mxu2 %v346_v60  ;;  %v131_v13 = vperm.slane %v128_v9, 1  ;;  %v491_v51 = vld [vmem:[#allocation7 + $0x58] sm:$0xff]  ;;  %v506_v52 = vld [vmem:[#allocation7 + $0xd0] sm:$0xff]  ;;  %v240_v56 = vld [vmem:[%s770_s4] sm:$0x3] }
  0x48   :  { %296 = vmatpush.msrb.mxu0 %v187_v14  ;;  %424 = vmatpush.msrb.mxu3 %v378_v55  ;;  %v504_v55 = vld [vmem:[#allocation7 + $0xc0] sm:$0xff]  ;;  %v501_v9 = vld [vmem:[#allocation7 + $0xa8] sm:$0xff] }
  0x49   :  { %316 = vmatpush.msrb.mxu1 %v219_v15  ;;  %405 = vmatpush.msrb.mxu2 %v344_v0 }
  0x4a   :  { %297 = vmatpush.msrb.mxu0 %v185_v16  ;;  %425 = vmatpush.msrb.mxu3 %v376_v59 }
  0x4b   :  { %317 = vmatpush.msrb.mxu1 %v217_v17  ;;  %406 = vmatpush.msrb.mxu2 %v342_v4 }
  0x4c   :  { %298 = vmatpush.msrb.mxu0 %v183_v18  ;;  %426 = vmatpush.msrb.mxu3 %v374_v63  ;;  %v242_v63 = vperm.slane %v240_v56, 0 }
  0x4d   :  { %318 = vmatpush.msrb.mxu1 %v215_v22  ;;  %v341_v22 = vld [vmem:[#allocation6 + $0x68] sm:$0xff]  ;;  %407 = vmatpush.msrb.mxu2 %v340_v20  ;;  %v482_v20 = vld [vmem:[#allocation7 + $0x10] sm:$0xff] }
  0x4e   :  { %299 = vmatpush.msrb.mxu0 %v181_v21  ;;  %427 = vmatpush.msrb.mxu3 %v372_v3  ;;  %v366_v21 = vld [vmem:[#allocation6 + $0x130] sm:$0xff] }
  0x4f   :  { %319 = vmatpush.msrb.mxu1 %v213_v26  ;;  %v339_v26 = vld [vmem:[#allocation6 + $0x58] sm:$0xff]  ;;  %408 = vmatpush.msrb.mxu2 %v338_v24 }
  0x50   :  { %300 = vmatpush.msrb.mxu0 %v179_v25  ;;  %428 = vmatpush.msrb.mxu3 %v370_v7  ;;  %v364_v25 = vld [vmem:[#allocation6 + $0x120] sm:$0xff]  ;;  %v502_v7 = vld [vmem:[#allocation7 + $0xb0] sm:$0xff] }
  0x51   :  { %320 = vmatpush.msrb.mxu1 %v211_v30  ;;  %v337_v30 = vld [vmem:[#allocation6 + $0x48] sm:$0xff]  ;;  %409 = vmatpush.msrb.mxu2 %v336_v28 }
  0x52   :  { %301 = vmatpush.msrb.mxu0 %v177_v29  ;;  %429 = vmatpush.msrb.mxu3 %v368_v10  ;;  %v362_v29 = vld [vmem:[#allocation6 + $0x110] sm:$0xff]  ;;  %v487_v10 = vld [vmem:[#allocation7 + $0x38] sm:$0xff] }
  0x53   :  { %321 = vmatpush.msrb.mxu1 %v209_v32  ;;  %v334_v32 = vld [vmem:[#allocation6 + $0x30] sm:$0xff] }
  0x54   :  { %438 = vmatpush.msra.mxu0 %v359_v39  ;;  %430 = vmatpush.msrb.mxu3 %v366_v21  ;;  %v331_v39 = vld [vmem:[#allocation6 + $0x18] sm:$0xff]  ;;  %v481_v21 = vld [vmem:[#allocation7 + $0x8] sm:$0xff] }
  0x55   :  { %458 = vmatpush.msra.mxu1 %v391_v34  ;;  %v335_v34 = vld [vmem:[#allocation6 + $0x38] sm:$0xff]  ;;  %410 = vmatpush.msrb.mxu2 %v334_v32 }
  0x56   :  { %439 = vmatpush.msra.mxu0 %v357_v43  ;;  %431 = vmatpush.msrb.mxu3 %v364_v25  ;;  %v510_v43 = vld [vmem:[#allocation7 + $0xf0] sm:$0xff] }
  0x57   :  { %459 = vmatpush.msra.mxu1 %v389_v36  ;;  %v332_v36 = vld [vmem:[#allocation6 + $0x20] sm:$0xff] }
  0x58   :  { %440 = vmatpush.msra.mxu0 %v355_v46  ;;  %432 = vmatpush.msrb.mxu3 %v362_v29  ;;  %v509_v46 = vld [vmem:[#allocation7 + $0xe8] sm:$0xff] }
  0x59   :  { %460 = vmatpush.msra.mxu1 %v387_v40  ;;  %411 = vmatpush.msrb.mxu2 %v332_v36  ;;  %v328_v40 = vld [vmem:[#allocation6] sm:$0xff] }
  0x5a   :  { %441 = vmatpush.msra.mxu0 %v353_v50  ;;  %433 = vmatpush.msrb.mxu3 %v360_v33  ;;  %v507_v50 = vld [vmem:[#allocation7 + $0xd8] sm:$0xff]  ;;  %v573_v36 = vld [vmem:[%s774_s8] ss:$0 sm:$0xff] }
  0x5b   :  { %461 = vmatpush.msra.mxu1 %v385_v45  ;;  %412 = vmatpush.msrb.mxu2 %v330_v38  ;;  %v494_v45 = vld [vmem:[#allocation7 + $0x70] sm:$0xff] }
  0x5c   :  { %442 = vmatpush.msra.mxu0 %v351_v54  ;;  %v505_v54 = vld [vmem:[#allocation7 + $0xc8] sm:$0xff] }
  0x5d   :  { %462 = vmatpush.msra.mxu1 %v383_v49  ;;  %413 = vmatpush.msrb.mxu2 %v328_v40  ;;  %v492_v49 = vld [vmem:[#allocation7 + $0x60] sm:$0xff] }
  0x5e   :  { %443 = vmatpush.msra.mxu0 %v349_v58  ;;  %v243_v58 = vperm.slane %v240_v56, 1 }
  0x5f   :  { %463 = vmatpush.msra.mxu1 %v381_v53  ;;  %v490_v53 = vld [vmem:[#allocation7 + $0x50] sm:$0xff] }
  0x60   :  { %444 = vmatpush.msra.mxu0 %v347_v62 }
  0x61   :  { %464 = vmatpush.msra.mxu1 %v379_v57  ;;  %v503_v57 = vld [vmem:[#allocation7 + $0xb8] sm:$0xff] }
  0x62   :  { %445 = vmatpush.msra.mxu0 %v345_v2 }
  0x63   :  { %465 = vmatpush.msra.mxu1 %v377_v61 }
  0x64   :  { %446 = vmatpush.msra.mxu0 %v343_v6  ;;  %v489_v6 = vld [vmem:[#allocation7 + $0x48] sm:$0xff] }
  0x65   :  { %466 = vmatpush.msra.mxu1 %v375_v1 }
  0x66   :  { %447 = vmatpush.msra.mxu0 %v341_v22  ;;  %v480_v22 = vld [vmem:[#allocation7] sm:$0xff] }
  0x67   :  { %467 = vmatpush.msra.mxu1 %v373_v5 }
  0x68   :  { %448 = vmatpush.msra.mxu0 %v339_v26 }
  0x69   :  { %468 = vmatpush.msra.mxu1 %v371_v8  ;;  %v488_v8 = vld [vmem:[#allocation7 + $0x40] sm:$0xff] }
  0x6a   :  { %449 = vmatpush.msra.mxu0 %v337_v30 }
  0x6b   :  { %469 = vmatpush.msra.mxu1 %v369_v11  ;;  %v500_v11 = vld [vmem:[#allocation7 + $0xa0] sm:$0xff] }
  0x6c   :  { %450 = vmatpush.msra.mxu0 %v335_v34 }
  0x6d   :  { %470 = vmatpush.msra.mxu1 %v367_v23  ;;  %v392_v23 = vld [vmem:[%s772_s6] sm:$0x3] }
  0x6e   :  { %451 = vmatpush.msra.mxu0 %v333_v37  ;;  %v395_v24 = vperm.slane %v392_v23, 1  ;;  %v394_v29 = vperm.slane %v392_v23, 0 }
  0x6f   :  { %471 = vmatpush.msra.mxu1 %v365_v27 }
  0x70   :  { %452 = vmatpush.msra.mxu0 %v331_v39 }
  0x71   :  { %472 = vmatpush.msra.mxu1 %v363_v31 }
  0x72   :  { %453 = vmatpush.msra.mxu0 %v329_v41 }
  0x73   :  { %473 = vmatpush.msra.mxu1 %v361_v35 }
  0xb0   :  { %v151_v14 = vpop.f32.mrf.mxu0 }
  0xb1   :  { %v171_v15 = vpop.f32.mrf.mxu1  ;;  %v152_v16 = vadd.f32 %v151_v14, %v130_v12  ;;  %v486_v12 = vld [vmem:[#allocation7 + $0x30] sm:$0xff]  ;;  %v485_v14 = vld [vmem:[#allocation7 + $0x28] sm:$0xff] }
  0xb2   :  { %v172_v17 = vadd.f32 %v171_v15, %v131_v13  ;;  %v499_v13 = vld [vmem:[#allocation7 + $0x98] sm:$0xff]  ;;  %v498_v15 = vld [vmem:[#allocation7 + $0x90] sm:$0xff] }
  0xb3   :  { %v174_v18 = vmax.f32 %v152_v16, 0.0  ;;  %v484_v16 = vld [vmem:[#allocation7 + $0x20] sm:$0xff] }
  0xb4   :  { %v175_v19 = vmax.f32 %v172_v17, 0.0  ;;  %v497_v17 = vld [vmem:[#allocation7 + $0x88] sm:$0xff] }
  0xb5   :  { %262 = vmatmul.f32.vlgmr.msra.gmra.mxu2 %v174_v18  ;;  %302 = vmatmul.f32.vlgmr.msrb.gmra.mxu0 %v174_v18  ;;  %v483_v18 = vld [vmem:[#allocation7 + $0x18] sm:$0xff] }
  0xb6   :  { %282 = vmatmul.f32.vlgmr.msra.gmra.mxu3 %v175_v19  ;;  %322 = vmatmul.f32.vlgmr.msrb.gmra.mxu1 %v175_v19  ;;  %v496_v19 = vld [vmem:[#allocation7 + $0x80] sm:$0xff] }
  0xb7   :  { %536 = vmatpush.msra.mxu3 %v511_v42  ;;  %516 = vmatpush.msra.mxu2 %v495_v44 }
  0xb9   :  { %537 = vmatpush.msra.mxu3 %v510_v43  ;;  %517 = vmatpush.msra.mxu2 %v494_v45 }
  0xbb   :  { %538 = vmatpush.msra.mxu3 %v509_v46  ;;  %518 = vmatpush.msra.mxu2 %v493_v47 }
  0xbd   :  { %539 = vmatpush.msra.mxu3 %v508_v48  ;;  %519 = vmatpush.msra.mxu2 %v492_v49 }
  0xbf   :  { %540 = vmatpush.msra.mxu3 %v507_v50  ;;  %520 = vmatpush.msra.mxu2 %v491_v51 }
  0xc1   :  { %541 = vmatpush.msra.mxu3 %v506_v52  ;;  %521 = vmatpush.msra.mxu2 %v490_v53 }
  0xc3   :  { %542 = vmatpush.msra.mxu3 %v505_v54  ;;  %522 = vmatpush.msra.mxu2 %v489_v6 }
  0xc5   :  { %543 = vmatpush.msra.mxu3 %v504_v55  ;;  %523 = vmatpush.msra.mxu2 %v488_v8 }
  0xc7   :  { %544 = vmatpush.msra.mxu3 %v503_v57  ;;  %524 = vmatpush.msra.mxu2 %v487_v10 }
  0xc9   :  { %545 = vmatpush.msra.mxu3 %v502_v7  ;;  %525 = vmatpush.msra.mxu2 %v486_v12 }
  0xcb   :  { %546 = vmatpush.msra.mxu3 %v501_v9  ;;  %526 = vmatpush.msra.mxu2 %v485_v14 }
  0xcd   :  { %547 = vmatpush.msra.mxu3 %v500_v11  ;;  %527 = vmatpush.msra.mxu2 %v484_v16 }
  0xcf   :  { %548 = vmatpush.msra.mxu3 %v499_v13  ;;  %528 = vmatpush.msra.mxu2 %v483_v18 }
  0xd1   :  { %549 = vmatpush.msra.mxu3 %v498_v15  ;;  %529 = vmatpush.msra.mxu2 %v482_v20 }
  0xd3   :  { %550 = vmatpush.msra.mxu3 %v497_v17  ;;  %530 = vmatpush.msra.mxu2 %v481_v21 }
  0xd5   :  { %551 = vmatpush.msra.mxu3 %v496_v19  ;;  %531 = vmatpush.msra.mxu2 %v480_v22 }
 0x132   :  { %v303_v59 = vpop.f32.mrf.mxu0 }
 0x133   :  { %v304_v60 = vadd.f32 %v303_v59, %v243_v58  ;;  %v323_v61 = vpop.f32.mrf.mxu1 }
 0x135   :  { %v324_v62 = vadd.f32 %v323_v61, %v304_v60 }
 0x137   :  { %v327_v0 = vmax.f32 %v324_v62, 0.0 }
 0x138   :  { %v263_v1 = vpop.f32.mrf.mxu2 }
 0x139   :  { %v264_v2 = vadd.f32 %v263_v1, %v242_v63  ;;  %434 = vmatmul.f32.vlgmr.msrb.gmra.mxu3 %v327_v0  ;;  %474 = vmatmul.f32.vlgmr.msra.gmra.mxu1 %v327_v0  ;;  %v283_v3 = vpop.f32.mrf.mxu3 }
 0x13b   :  { %v284_v4 = vadd.f32 %v283_v3, %v264_v2 }
 0x13d   :  { %v326_v5 = vmax.f32 %v284_v4, 0.0 }
 0x13f   :  { %414 = vmatmul.f32.vlgmr.msrb.gmra.mxu2 %v326_v5  ;;  %454 = vmatmul.f32.vlgmr.msra.gmra.mxu0 %v326_v5 }
 0x1b6   :  { %v475_v27 = vpop.f32.mrf.mxu1 }
 0x1bc   :  { %v455_v25 = vpop.f32.mrf.mxu0  ;;  %v435_v33 = vpop.f32.mrf.mxu3 }
 0x1bd   :  { %v456_v26 = vadd.f32 %v455_v25, %v395_v24 }
 0x1bf   :  { %v476_v28 = vadd.f32 %v475_v27, %v456_v26 }
 0x1c1   :  { %v479_v30 = vmax.f32 %v476_v28, 0.0 }
 0x1c2   :  { %v415_v31 = vpop.f32.mrf.mxu2 }
 0x1c3   :  { %v416_v32 = vadd.f32 %v415_v31, %v394_v29  ;;  %552 = vmatmul.f32.vlgmr.msra.gmra.mxu3 %v479_v30 }
 0x1c5   :  { %v436_v34 = vadd.f32 %v435_v33, %v416_v32 }
 0x1c7   :  { %v478_v35 = vmax.f32 %v436_v34, 0.0 }
 0x1c9   :  { %532 = vmatmul.f32.vlgmr.msra.gmra.mxu2 %v478_v35 }
 0x246   :  { %v553_v39 = vpop.f32.mrf.mxu3 }
 0x24c   :  { %v533_v37 = vpop.f32.mrf.mxu2 }
 0x24d   :  { %v534_v38 = vadd.f32 %v573_v36, %v533_v37 }
 0x24f   :  { %v554_v40 = vadd.f32 %v553_v39, %v534_v38 }
 0x251   :  { %574 = vtanh.f32 %v554_v40 }
 0x257   :  { %v575_v41 = vpop.eup %574 }
 0x258   :  { %557 = vst [vmem:[%s775_s9] sm:$0xff] %v575_v41 }
 0x259   :  { %562 = vsyncpa [#allocation3], 1 }
 0x25a   :  { %563 = vsyncpa [#allocation5], 1 }
 0x25b   :  { %564 = vsyncpa [#allocation8], 1 }

</bundles_post_ra>
